<compile_context>
chip_gen: v5e
topology: v5e:2x2
jax: 0.10.0
libtpu: 0.0.40
codegen_flags: <defaults>
</compile_context>

<pallas_src>
import jax
import jax.numpy as jnp
from jax.experimental import pallas as pl
from jax.experimental.pallas import tpu as pltpu
import numpy as np

LANE = 128     # f32 lane width
SUBLANE = 8    # f32 sublane width


def classification_kernel(x_ref, ew_ref, eb_ref, alpha_ref, fw_ref, fb_ref, o_ref):
    # --- embedding_net: Linear(D_in, 2) on the MXU (D_in-deep contraction) ---
    x = x_ref[...]                                                     # (TB, D_in)
    emb = jnp.dot(x, ew_ref[...], preferred_element_type=jnp.float32)  # (TB, 2)
    emb = emb + eb_ref[...]                                            # broadcast (1, 2)

    # --- nn.PReLU(): max(0,x) + a*min(0,x), single shared scalar slope (SMEM) ---
    a = alpha_ref[0, 0]
    h = jnp.where(emb >= 0.0, emb, a * emb)                            # (TB, 2)

    # --- fc1: Linear(2, C_pad).  K=2 contraction -> two VPU broadcast-FMAs
    #     instead of an MXU matmul.  fw/fb are class-padded to a full lane width;
    #     padded bias columns are -inf so they vanish in the softmax. ---
    fw = fw_ref[...]                                                   # (2, C_pad)
    logits = (h[:, 0:1] * fw[0:1, :]
              + h[:, 1:2] * fw[1:2, :]
              + fb_ref[...])                                           # (TB, C_pad)

    # --- numerically stable log_softmax over the last (lane) axis ---
    m = jnp.max(logits, axis=-1, keepdims=True)
    z = logits - m                                                     # -inf in padded cols
    lse = jnp.log(jnp.sum(jnp.exp(z), axis=-1, keepdims=True))
    o_ref[...] = z - lse                                               # lane-dense store


def classification_net(x, emb_w, emb_b, alpha, fc1_w, fc1_b, *, tb=1024):
    """Fused forward pass.  x: (B, D_in) f32.  Returns (B, C) f32 log-probs."""
    B, D_in = x.shape
    C = fc1_w.shape[1]

    # Pad the class dim to a full 128-lane width for unmasked stores.
    # Padded weight columns are 0 and padded bias columns are -inf, so the
    # padded logits are -inf and contribute exp(-inf)=0 to the normalization.
    C_pad = max(LANE, ((C + LANE - 1) // LANE) * LANE)
    fw_p = jnp.zeros((2, C_pad), jnp.float32).at[:, :C].set(fc1_w.astype(jnp.float32))
    fb_p = jnp.full((1, C_pad), -jnp.inf, jnp.float32).at[:, :C].set(
        fc1_b.astype(jnp.float32))

    # Batch tile: multiple of 8 (f32 sublane), capped at `tb` (VMEM per step is
    # ~TB*(D_in + C_pad)*4 bytes, x2 for double buffering — tiny at these widths).
    TB = min(int(tb), ((B + SUBLANE - 1) // SUBLANE) * SUBLANE)
    TB = max(SUBLANE, (TB // SUBLANE) * SUBLANE)
    B_pad = ((B + TB - 1) // TB) * TB
    x_p = x.astype(jnp.float32)
    if B_pad != B:
        x_p = jnp.zeros((B_pad, D_in), jnp.float32).at[:B].set(x_p)

    grid = (B_pad // TB,)
    out = pl.pallas_call(
        classification_kernel,
        out_shape=jax.ShapeDtypeStruct((B_pad, C_pad), jnp.float32),
        grid=grid,
        in_specs=[
            pl.BlockSpec((TB, D_in), lambda i: (i, 0)),         # x: batch-tiled
            pl.BlockSpec((D_in, 2), lambda i: (0, 0)),          # emb_w: resident
            pl.BlockSpec((1, 2), lambda i: (0, 0)),             # emb_b: resident
            pl.BlockSpec(memory_space=pltpu.MemorySpace.SMEM),  # alpha: SMEM scalar
            pl.BlockSpec((2, C_pad), lambda i: (0, 0)),         # fc1_w (padded)
            pl.BlockSpec((1, C_pad), lambda i: (0, 0)),         # fc1_b (padded)
        ],
        out_specs=pl.BlockSpec((TB, C_pad), lambda i: (i, 0)),
        compiler_params=pltpu.CompilerParams(
            dimension_semantics=("parallel",)),                 # megacore on v7x
    )(x_p, emb_w.astype(jnp.float32), emb_b.astype(jnp.float32),
      alpha.astype(jnp.float32), fw_p, fb_p)

    return out[:B, :C]


def reference(x, emb_w, emb_b, alpha, fc1_w, fc1_b):
    emb = x @ emb_w + emb_b
    h = jnp.where(emb >= 0.0, emb, alpha[0, 0] * emb)
    logits = h @ fc1_w + fc1_b
    return jax.nn.log_softmax(logits, axis=-1)


def _make_params(key, d_in, n_classes):
    kew, keb, kfw, kfb = jax.random.split(key, 4)
    emb_bound = 1.0 / np.sqrt(d_in)
    emb_w = jax.random.uniform(kew, (d_in, 2), jnp.float32, -emb_bound, emb_bound)
    emb_b = jax.random.uniform(keb, (1, 2), jnp.float32, -emb_bound, emb_bound)
    alpha = jnp.full((1, 1), 0.25, dtype=jnp.float32)  # nn.PReLU() default
    fc1_bound = 1.0 / np.sqrt(2.0)
    fc1_w = jax.random.uniform(kfw, (2, n_classes), jnp.float32, -fc1_bound, fc1_bound)
    fc1_b = jax.random.uniform(kfb, (1, n_classes), jnp.float32, -fc1_bound, fc1_bound)
    return emb_w, emb_b, alpha, fc1_w, fc1_b


if __name__ == "__main__":
    D_IN, N_CLASSES = 32, 10
    key = jax.random.PRNGKey(0)
    kx, kx2, kp = jax.random.split(key, 3)
    emb_w, emb_b, alpha, fc1_w, fc1_b = _make_params(kp, D_IN, N_CLASSES)

    # Small-shape check (single grid step).
    x = jax.random.normal(kx, (8, D_IN), dtype=jnp.float32)
    out = jax.block_until_ready(classification_net(x, emb_w, emb_b, alpha, fc1_w, fc1_b))
    ref = jax.block_until_ready(reference(x, emb_w, emb_b, alpha, fc1_w, fc1_b))
    np.testing.assert_allclose(np.asarray(out), np.asarray(ref), rtol=1e-5, atol=1e-5)

    # Larger batch: exercises the batch grid, double buffering and row padding.
    x2 = jax.random.normal(kx2, (2000, D_IN), dtype=jnp.float32)
    out2 = jax.block_until_ready(
        classification_net(x2, emb_w, emb_b, alpha, fc1_w, fc1_b, tb=512))
    ref2 = jax.block_until_ready(reference(x2, emb_w, emb_b, alpha, fc1_w, fc1_b))
    np.testing.assert_allclose(np.asarray(out2), np.asarray(ref2), rtol=1e-5, atol=1e-5)

    print("KERNEL_OK")
</pallas_src>

<mosaic_0001>
module attributes {stable_mosaic.version = 11 : i64} {
  func.func @classification_kernel(%arg0: i32, %arg1: memref<8x32xf32, #tpu.memory_space<vmem>>, %arg2: memref<32x2xf32, #tpu.memory_space<vmem>>, %arg3: memref<1x2xf32, #tpu.memory_space<vmem>>, %arg4: memref<1x1xf32, #tpu.memory_space<smem>>, %arg5: memref<2x128xf32, #tpu.memory_space<vmem>>, %arg6: memref<1x128xf32, #tpu.memory_space<vmem>>, %arg7: memref<8x128xf32, #tpu.memory_space<vmem>>) attributes {dimension_semantics = [#tpu.dimension_semantics<parallel>], iteration_bounds = array<i64: 1>, scalar_prefetch = 0 : i64, scratch_operands = 0 : i64, tpu.core_type = #tpu.core_type<tc>, window_params = [{transform_indices = @transform_0, window_bounds = array<i64: 8, 32>}, {pipeline_mode = #tpu.pipeline_mode<synchronous>, transform_indices = @transform_1, window_bounds = array<i64: 32, 2>}, {pipeline_mode = #tpu.pipeline_mode<synchronous>, transform_indices = @transform_2, window_bounds = array<i64: 1, 2>}, {transform_indices = @transform_3, window_bounds = array<i64: 1, 1>}, {pipeline_mode = #tpu.pipeline_mode<synchronous>, transform_indices = @transform_4, window_bounds = array<i64: 2, 128>}, {pipeline_mode = #tpu.pipeline_mode<synchronous>, transform_indices = @transform_5, window_bounds = array<i64: 1, 128>}, {transform_indices = @transform_6, window_bounds = array<i64: 8, 128>}]} {
    %c0 = arith.constant 0 : index
    %c0_0 = arith.constant 0 : index
    %0 = vector.load %arg1[%c0, %c0_0] : memref<8x32xf32, #tpu.memory_space<vmem>>, vector<8x32xf32>
    %c0_1 = arith.constant 0 : index
    %c0_2 = arith.constant 0 : index
    %1 = vector.load %arg2[%c0_1, %c0_2] : memref<32x2xf32, #tpu.memory_space<vmem>>, vector<32x2xf32>
    %cst = arith.constant dense<0.000000e+00> : vector<8x2xf32>
    %2 = tpu.matmul %0, %1, %cst {dimension_numbers = #tpu.dot_dimension_numbers<[1], [0], [0], [1], [0, 0, 1, 1], [], []>} : vector<8x32xf32>, vector<32x2xf32>, vector<8x2xf32> -> vector<8x2xf32>
    %c0_3 = arith.constant 0 : index
    %c0_4 = arith.constant 0 : index
    %3 = vector.load %arg3[%c0_3, %c0_4] : memref<1x2xf32, #tpu.memory_space<vmem>>, vector<1x2xf32>
    %4 = vector.broadcast %3 : vector<1x2xf32> to vector<8x2xf32>
    %5 = arith.addf %2, %4 : vector<8x2xf32>
    %c0_5 = arith.constant 0 : index
    %c0_6 = arith.constant 0 : index
    %6 = memref.load %arg4[%c0_5, %c0_6] : memref<1x1xf32, #tpu.memory_space<smem>>
    %cst_7 = arith.constant 0.000000e+00 : f32
    %7 = vector.broadcast %cst_7 : f32 to vector<8x2xf32>
    %8 = arith.cmpf oge, %5, %7 : vector<8x2xf32>
    %9 = vector.broadcast %6 : f32 to vector<8x2xf32>
    %10 = arith.mulf %9, %5 : vector<8x2xf32>
    %11 = arith.select %8, %5, %10 : vector<8x2xi1>, vector<8x2xf32>
    %c0_8 = arith.constant 0 : index
    %c0_9 = arith.constant 0 : index
    %12 = vector.load %arg5[%c0_8, %c0_9] : memref<2x128xf32, #tpu.memory_space<vmem>>, vector<2x128xf32>
    %13 = vector.extract_strided_slice %11 {offsets = [0, 0], sizes = [8, 1], strides = [1, 1]} : vector<8x2xf32> to vector<8x1xf32>
    %14 = vector.extract_strided_slice %12 {offsets = [0, 0], sizes = [1, 128], strides = [1, 1]} : vector<2x128xf32> to vector<1x128xf32>
    %15 = vector.broadcast %13 : vector<8x1xf32> to vector<8x128xf32>
    %16 = vector.broadcast %14 : vector<1x128xf32> to vector<8x128xf32>
    %17 = arith.mulf %15, %16 : vector<8x128xf32>
    %18 = vector.extract_strided_slice %11 {offsets = [0, 1], sizes = [8, 1], strides = [1, 1]} : vector<8x2xf32> to vector<8x1xf32>
    %19 = vector.extract_strided_slice %12 {offsets = [1, 0], sizes = [1, 128], strides = [1, 1]} : vector<2x128xf32> to vector<1x128xf32>
    %20 = vector.broadcast %18 : vector<8x1xf32> to vector<8x128xf32>
    %21 = vector.broadcast %19 : vector<1x128xf32> to vector<8x128xf32>
    %22 = arith.mulf %20, %21 : vector<8x128xf32>
    %23 = arith.addf %17, %22 : vector<8x128xf32>
    %c0_10 = arith.constant 0 : index
    %c0_11 = arith.constant 0 : index
    %24 = vector.load %arg6[%c0_10, %c0_11] : memref<1x128xf32, #tpu.memory_space<vmem>>, vector<1x128xf32>
    %25 = vector.broadcast %24 : vector<1x128xf32> to vector<8x128xf32>
    %26 = arith.addf %23, %25 : vector<8x128xf32>
    %cst_12 = arith.constant dense<0xFF800000> : vector<8xf32>
    %27 = vector.multi_reduction <maximumf>, %26, %cst_12 [1] : vector<8x128xf32> to vector<8xf32>
    %28 = vector.shape_cast %27 : vector<8xf32> to vector<8x1xf32>
    %29 = vector.broadcast %28 : vector<8x1xf32> to vector<8x128xf32>
    %30 = arith.subf %26, %29 : vector<8x128xf32>
    %31 = math.exp %30 : vector<8x128xf32>
    %cst_13 = arith.constant dense<0.000000e+00> : vector<8xf32>
    %32 = vector.multi_reduction <add>, %31, %cst_13 [1] : vector<8x128xf32> to vector<8xf32>
    %33 = vector.shape_cast %32 : vector<8xf32> to vector<8x1xf32>
    %34 = math.log %33 : vector<8x1xf32>
    %35 = vector.broadcast %34 : vector<8x1xf32> to vector<8x128xf32>
    %36 = arith.subf %30, %35 : vector<8x128xf32>
    %c0_14 = arith.constant 0 : index
    %c0_15 = arith.constant 0 : index
    %37 = vector.load %arg7[%c0_14, %c0_15] : memref<8x128xf32, #tpu.memory_space<vmem>>, vector<8x128xf32>
    tpu.vector_store %arg7[%c0_14, %c0_15], %36 {strides = array<i32>} : memref<8x128xf32, #tpu.memory_space<vmem>>, vector<8x128xf32>,
    return
  }
  func.func @transform_0(%arg0: i32) -> (i32, i32) {
    %c0_i32 = arith.constant 0 : i32
    %c0_i32_0 = arith.constant 0 : i32
    return %arg0, %c0_i32 : i32, i32
  }
  func.func @transform_1(%arg0: i32) -> (i32, i32) {
    %c0_i32 = arith.constant 0 : i32
    %c0_i32_0 = arith.constant 0 : i32
    %c0_i32_1 = arith.constant 0 : i32
    return %c0_i32, %c0_i32_0 : i32, i32
  }
  func.func @transform_2(%arg0: i32) -> (i32, i32) {
    %c0_i32 = arith.constant 0 : i32
    %c0_i32_0 = arith.constant 0 : i32
    %c0_i32_1 = arith.constant 0 : i32
    return %c0_i32, %c0_i32_0 : i32, i32
  }
  func.func @transform_3(%arg0: i32) -> (i32, i32) {
    %c0_i32 = arith.constant 0 : i32
    %c0_i32_0 = arith.constant 0 : i32
    %c0_i32_1 = arith.constant 0 : i32
    return %c0_i32, %c0_i32_0 : i32, i32
  }
  func.func @transform_4(%arg0: i32) -> (i32, i32) {
    %c0_i32 = arith.constant 0 : i32
    %c0_i32_0 = arith.constant 0 : i32
    %c0_i32_1 = arith.constant 0 : i32
    return %c0_i32, %c0_i32_0 : i32, i32
  }
  func.func @transform_5(%arg0: i32) -> (i32, i32) {
    %c0_i32 = arith.constant 0 : i32
    %c0_i32_0 = arith.constant 0 : i32
    %c0_i32_1 = arith.constant 0 : i32
    return %c0_i32, %c0_i32_0 : i32, i32
  }
  func.func @transform_6(%arg0: i32) -> (i32, i32) {
    %c0_i32 = arith.constant 0 : i32
    %c0_i32_0 = arith.constant 0 : i32
    return %arg0, %c0_i32 : i32, i32
  }
}

</mosaic_0001>

<bundles_post_ra>
// kernel: tpu_custom_call.1
= control target key start
LH: loop header
LB: loop body
LE: loop exit
PB: predicated region body
PF: predicated region fallthrough
CT: control target
= control target key end

     0   :  { %s216_s0 = inlined_call_operand.vmem [shape: f32[8,32], index: 0, kind: input, shape index: {}]   ;;  %s217_s1 = inlined_call_operand.vmem [shape: f32[32,2], index: 1, kind: input, shape index: {}]   ;;  %s218_s2 = inlined_call_operand.vmem [shape: f32[1,2], index: 2, kind: input, shape index: {}]   ;;  %s219_s3 = inlined_call_operand.<no memory space> [shape: f32[1,1], index: 3, kind: input, shape index: {}]   ;;  %s220_s4 = inlined_call_operand.vmem [shape: f32[2,128], index: 4, kind: input, shape index: {}]   ;;  %s221_s5 = inlined_call_operand.vmem [shape: f32[1,128], index: 5, kind: input, shape index: {}]   ;;  %s222_s6 = inlined_call_operand.hbm [shape: f32[8,128], index: 6, kind: output, shape index: {}]  }
   0x1   :  { %v29_v0 = vld [vmem:[%s217_s1 + $0x18] sm:$0xff]  ;;  %v28_v1 = vld [vmem:[%s217_s1 + $0x10] sm:$0xff]  ;;  %v27_v2 = vld [vmem:[%s217_s1 + $0x8] sm:$0xff] }
   0x2   :  { %50 = vmatpush.msra.mxu0 %v29_v0 }
   0x3   :  { %12 = vsyncpa [#allocation4], 0  ;;  %v26_v3 = vld [vmem:[%s217_s1] sm:$0xff]  ;;  %vm34_vm0 = vcmask 261120   ;;  %v148_v5 = vmov 0   ;;  %v60_v8 = vstv %s219_s3  ;;  %v149_v12 = vmov 1  }
   0x4   :  { %51 = vmatpush.msra.mxu0 %v28_v1  ;;  %v25_v4 = vld [vmem:[%s216_s0] sm:$0xff]  ;;  %114 = vset.pattern.permute.xlu0 %v148_v5  ;;  %s101_s14 = sshll.u32 %s222_s6, 4  ;;  %s102_s14 = int_to_ptr.hbm [resolvable:$true] %s101_s14 }
   0x5   :  { %v116_v6 = vld [vmem:[%s218_s2] ss:$0 sm:$0xff] }
   0x6   :  { %52 = vmatpush.msra.mxu0 %v27_v2  ;;  %v63_v14 = vld [vmem:[%s220_s4] sm:$0x3]  ;;  %s150_s4 = smov [#allocation3]  }
   0x7   :  { %v69_v15 = vperm.slane %v63_v14, 0  ;;  %v75_v16 = vperm.slane %v63_v14, 1  ;;  %v117_v20 = vld [vmem:[%s221_s5] ss:$0 sm:$0xff]  ;;  %s99_s11 = sshll.u32 %s150_s4, 4  ;;  %s100_s11 = int_to_ptr.vmem [resolvable:$true] %s99_s11 }
   0x8   :  { %53 = vmatpush.msra.mxu0 %v26_v3 }
   0x9   :  { %110 = vmatmul.msk.f32.vlgmr.msra.gmra.mxu0 %vm34_vm0, %v25_v4 }
  0x86   :  { %v55_v7 = vpop.f32.mrf.mxu0 }
  0x87   :  { %v56_v9 = vadd.f32 %v116_v6, %v55_v7 }
  0x89   :  { %vm59_vm1 = vcmp.ge.f32.partialorder %v56_v9, 0.0  ;;  %v61_v10 = vmul.f32 %v60_v8, %v56_v9 }
  0x8b   :  { %v62_v11 = vsel %vm59_vm1, %v56_v9, %v61_v10 }
  0x8c   :  { %66 = vperm.xlu0 %114, %v62_v11  }
  0x94   :  { %115 = vset.pattern.permute.xlu0 %v149_v12 }
  0x95   :  { %72 = vperm.xlu0 %115, %v62_v11  }
  0xfe   :  { %v67_v13 = vpop.permute.xlu0 %66 }
  0xff   :  { %v70_v18 = vmul.f32 %v69_v15, %v67_v13 }
 0x107   :  { %v73_v17 = vpop.permute.xlu0 %72 }
 0x108   :  { %v76_v19 = vmul.f32 %v75_v16, %v73_v17 }
 0x10a   :  { %v77_v21 = vadd.f32 %v76_v19, %v70_v18 }
 0x10c   :  { %v82_v22 = vadd.f32 %v117_v20, %v77_v21 }
 0x10e   :  { %83 = vmax.xlane.f32.xlu1 %v82_v22 }
 0x181   :  { %v84_v23 = vpop.xlane.xlu1 %83 }
 0x182   :  { %v85_v24 = vsub.f32 %v82_v22, %v84_v23 }
 0x184   :  { %v86_v25 = vmul.f32 1.442695, %v85_v24 }
 0x186   :  { %118 = vpow2.f32 %v86_v25 }
 0x18c   :  { %v119_v26 = vpop.eup %118 }
 0x18d   :  { %88 = vadd.xlane.f32.xlu1 %v119_v26 }
 0x200   :  { %v89_v27 = vpop.xlane.xlu1 %88 }
 0x201   :  { %120 = vlog2.f32 %v89_v27 }
 0x207   :  { %v121_v28 = vpop.eup %120 }
 0x208   :  { %v91_v29 = vmul.f32 0.6931472, %v121_v28 }
 0x20a   :  { %v92_v30 = vsub.f32 %v85_v24, %v91_v29 }
 0x20c   :  { %93 = vst [vmem:[#allocation3] sm:$0xff] %v92_v30 }
 0x20d   :  { %104 = dma.vmem_to_hbm [thread:$0]  %s100_s11, 128, %s102_s14, [#allocation4]  }
 0x20e   :  { %146 = dma.done.wait [#allocation4], 128  }
 0x20f   :  { %147 = vsyncadd [#allocation4], 4294967168 }
 0x210   :  { %109 = vsyncpa [#allocation4], 1 }

</bundles_post_ra>
